<compile_context>
chip_gen: v7x
topology: tpu7x:2x2x1
jax: 0.10.0
libtpu: 0.0.40
codegen_flags: <defaults>
</compile_context>

<pallas_src>
import functools

import jax
import jax.numpy as jnp
from jax.experimental import pallas as pl
from jax.experimental.pallas import tpu as pltpu


# ---------------------------------------------------------------------------
# Generation-aware VMEM sizing & tile pickers
# ---------------------------------------------------------------------------
def _vmem_limit_bytes():
    """~3/4 of physical VMEM: 96 MiB on v5e/v6e (128 MiB), 48 MiB on v7x (64 MiB)."""
    phys = 64 << 20
    try:
        info = pltpu.get_tpu_info()
        cap = getattr(info, "vmem_capacity_bytes", None)
        if cap:
            phys = int(cap)
    except Exception:
        pass
    return (phys * 3) // 4


def _sublane_align(itemsize):
    # f32 -> 8, bf16 -> 16, int8/fp8 -> 32 sublanes per packed vreg row.
    return {4: 8, 2: 16, 1: 32}.get(int(itemsize), 8)


def _pick_tile_n(n, per_row_bytes, resident_bytes, vmem_limit, itemsize):
    """Largest MXU-friendly node tile s.t. tile buffers + residents fit VMEM."""
    if n <= 512:
        return n                                    # small graphs: one block
    avail = min(vmem_limit - resident_bytes - (2 << 20), vmem_limit // 2)
    avail = max(avail, 4 << 20)
    tn = int(avail // max(per_row_bytes, 1))
    if tn >= n:
        return n
    align = max(256, _sublane_align(itemsize))      # 256 fills the 256x256 MXU
    tn = max(align, (tn // align) * align)
    return min(tn, n)


def _pick_tile_c(c, d_in, w_itemsize, vmem_limit):
    """Column tile so the double-buffered resident weight slab stays <= VMEM/3."""
    if c <= 256 or 2 * d_in * c * w_itemsize <= vmem_limit // 3:
        return c
    tc = (vmem_limit // 3) // max(2 * d_in * w_itemsize, 1)
    tc = max(256, (tc // 256) * 256)
    return min(tc, c)


# ---------------------------------------------------------------------------
# Kernels
# ---------------------------------------------------------------------------
def _linear_kernel(x_ref, w_ref, b_ref, o_ref):
    acc = jnp.dot(x_ref[...], w_ref[...], preferred_element_type=jnp.float32)
    o_ref[...] = (acc + b_ref[...]).astype(o_ref.dtype)


def _shared_max_kernel(x_ref, w_ref, b_ref, o_ref, *, H):
    # x: (tn, D_in); w: (H, D_in, D_out) resident; b: (H, 1, D_out) resident.
    x = x_ref[...]
    acc = jnp.dot(x, w_ref[0], preferred_element_type=jnp.float32) + b_ref[0]
    for h in range(1, H):                           # H is small & static
        y = jnp.dot(x, w_ref[h], preferred_element_type=jnp.float32) + b_ref[h]
        acc = jnp.maximum(acc, y)
    o_ref[...] = acc.astype(o_ref.dtype)


def _per_head_reduce_kernel(x_ref, w_ref, b_ref, o_ref, *, H, mode):
    # x: (H, tn, D_in); w: (H, D_in, D_out) resident; b: (H, 1, D_out) resident.
    acc = jnp.dot(x_ref[0], w_ref[0], preferred_element_type=jnp.float32) + b_ref[0]
    for h in range(1, H):
        y = jnp.dot(x_ref[h], w_ref[h], preferred_element_type=jnp.float32) + b_ref[h]
        acc = (acc + y) if mode == "mean" else jnp.maximum(acc, y)
    if mode == "mean":
        acc = acc * (1.0 / H)
    o_ref[...] = acc.astype(o_ref.dtype)


# ---------------------------------------------------------------------------
# Shared-input path (x: (N, D_in))
# ---------------------------------------------------------------------------
def _shared_linear_call(x, w, b):
    """Tiled y = x @ w + b with resident (optionally column-tiled) weights."""
    N, D_in = x.shape
    C = w.shape[1]
    limit = _vmem_limit_bytes()
    itemsize = x.dtype.itemsize

    tc = _pick_tile_c(C, D_in, w.dtype.itemsize, limit)
    resident = 2 * D_in * tc * w.dtype.itemsize + 2 * tc * b.dtype.itemsize
    per_row = 2 * D_in * itemsize + 2 * tc * itemsize + tc * 4   # x, out, f32 acc
    tn = _pick_tile_n(N, per_row, resident, limit, itemsize)
    nt, nc = pl.cdiv(N, tn), pl.cdiv(C, tc)

    x_spec = pl.BlockSpec((tn, D_in), lambda n, c: (n, 0))
    if nt * nc >= 8:
        # short per-tile compute in the mem-bound regime: hide the x DMA deeper.
        x_spec = pl.BlockSpec((tn, D_in), lambda n, c: (n, 0),
                              pipeline_mode=pl.Buffered(3))

    return pl.pallas_call(
        _linear_kernel,
        out_shape=jax.ShapeDtypeStruct((N, C), x.dtype),
        grid=(nt, nc),
        in_specs=[
            x_spec,
            pl.BlockSpec((D_in, tc), lambda n, c: (0, c)),   # resident over N tiles
            pl.BlockSpec((1, tc), lambda n, c: (0, c)),      # resident over N tiles
        ],
        out_specs=pl.BlockSpec((tn, tc), lambda n, c: (n, c)),
        cost_estimate=pl.CostEstimate(
            flops=2 * N * D_in * C,
            transcendentals=0,
            bytes_accessed=(N * D_in + D_in * C + N * C) * itemsize),
        compiler_params=pltpu.CompilerParams(
            dimension_semantics=("parallel", "parallel"),
            vmem_limit_bytes=limit,
        ),
    )(x, w, b)


def _shared_max_call(x, weights, biases):
    N, D_in = x.shape
    H, _, D_out = weights.shape
    limit = _vmem_limit_bytes()
    itemsize = x.dtype.itemsize
    b3 = biases.reshape(H, 1, D_out)

    resident = 2 * H * D_in * D_out * weights.dtype.itemsize + 2 * H * D_out * 4
    per_row = 2 * D_in * itemsize + 2 * D_out * itemsize + 2 * D_out * 4
    tn = _pick_tile_n(N, per_row, resident, limit, itemsize)
    nt = pl.cdiv(N, tn)

    return pl.pallas_call(
        functools.partial(_shared_max_kernel, H=H),
        out_shape=jax.ShapeDtypeStruct((N, D_out), x.dtype),
        grid=(nt,),
        in_specs=[
            pl.BlockSpec((tn, D_in), lambda n: (n, 0)),
            pl.BlockSpec((H, D_in, D_out), lambda n: (0, 0, 0)),   # resident
            pl.BlockSpec((H, 1, D_out), lambda n: (0, 0, 0)),      # resident
        ],
        out_specs=pl.BlockSpec((tn, D_out), lambda n: (n, 0)),
        compiler_params=pltpu.CompilerParams(
            dimension_semantics=("parallel",),
            vmem_limit_bytes=limit,
        ),
    )(x, weights, b3)


def _forward_shared(x, weights, biases, mode):
    N, D_in = x.shape
    H, _, D_out = weights.shape

    if mode == "mean":
        # Exact by linearity: mean_h(x @ W_h + b_h) == x @ mean_h(W_h) + mean_h(b_h)
        w_mean = jnp.mean(weights, axis=0)                        # (D_in, D_out)
        b_mean = jnp.mean(biases, axis=0).reshape(1, D_out)
        return _shared_linear_call(x, w_mean, b_mean)

    if mode == "max":
        return _shared_max_call(x, weights, biases)

    # stack / concat: fused head-major GEMM, lane-dense (N, H*D_out) output
    HD = H * D_out
    w_cat = jnp.transpose(weights, (1, 0, 2)).reshape(D_in, HD)   # head-major cols
    b_cat = biases.reshape(1, HD)
    out = _shared_linear_call(x, w_cat, b_cat)
    if mode == "concat":
        return out
    # 'stack': head-major (N, H*D_out) -> (N, D_out, H); kept outside the kernel
    # so the kernel store stays lane-dense.
    return out.reshape(N, H, D_out).transpose(0, 2, 1)


# ---------------------------------------------------------------------------
# Per-head-input path (x: (N, D_in, H))
# ---------------------------------------------------------------------------
def _forward_per_head(x, weights, biases, mode):
    H, D_in, D_out = weights.shape
    N = x.shape[0]
    limit = _vmem_limit_bytes()
    itemsize = x.dtype.itemsize
    b3 = biases.reshape(H, 1, D_out)

    # One relayout so D_in sits on lanes; allow_input_fusion lets XLA fuse this
    # transpose into the kernel's input DMA (no standalone HBM pass under jit).
    x_heads = jnp.transpose(x, (2, 0, 1))                          # (H, N, D_in)

    if mode in ("mean", "max"):
        # grid = (nt,): weights fully resident, head loop in-kernel.
        resident = 2 * H * D_in * D_out * weights.dtype.itemsize + 2 * H * D_out * 4
        per_row = 2 * H * D_in * itemsize + 2 * D_out * itemsize + 2 * D_out * 4
        tn = _pick_tile_n(N, per_row, resident, limit, itemsize)
        nt = pl.cdiv(N, tn)
        return pl.pallas_call(
            functools.partial(_per_head_reduce_kernel, H=H, mode=mode),
            out_shape=jax.ShapeDtypeStruct((N, D_out), x.dtype),
            grid=(nt,),
            in_specs=[
                pl.BlockSpec((H, tn, D_in), lambda n: (0, n, 0)),
                pl.BlockSpec((H, D_in, D_out), lambda n: (0, 0, 0)),   # resident
                pl.BlockSpec((H, 1, D_out), lambda n: (0, 0, 0)),      # resident
            ],
            out_specs=pl.BlockSpec((tn, D_out), lambda n: (n, 0)),
            compiler_params=pltpu.CompilerParams(
                dimension_semantics=("parallel",),
                vmem_limit_bytes=limit,
                allow_input_fusion=[True, False, False],
            ),
        )(x_heads, weights, b3)

    # stack / concat: per-head linear over an (H, nt) grid.
    resident = 2 * D_in * D_out * weights.dtype.itemsize + 2 * D_out * 4
    per_row = 2 * D_in * itemsize + 2 * D_out * itemsize + D_out * 4
    tn = _pick_tile_n(N, per_row, resident, limit, itemsize)
    nt = pl.cdiv(N, tn)
    params = pltpu.CompilerParams(
        dimension_semantics=("parallel", "parallel"),
        vmem_limit_bytes=limit,
        allow_input_fusion=[True, False, False],
    )
    in_specs = [
        pl.BlockSpec((None, tn, D_in), lambda h, n: (h, n, 0)),
        pl.BlockSpec((None, D_in, D_out), lambda h, n: (h, 0, 0)),
        pl.BlockSpec((None, 1, D_out), lambda h, n: (h, 0, 0)),
    ]

    if mode == "concat" and D_out % 128 == 0:
        # Write directly into the lane-dense head-major (N, H*D_out) output —
        # no (H, N, D_out) intermediate, no post-kernel transpose HBM pass.
        return pl.pallas_call(
            _linear_kernel,
            out_shape=jax.ShapeDtypeStruct((N, H * D_out), x.dtype),
            grid=(H, nt),
            in_specs=in_specs,
            out_specs=pl.BlockSpec((tn, D_out), lambda h, n: (n, h)),
            compiler_params=params,
        )(x_heads, weights, b3)

    out = pl.pallas_call(
        _linear_kernel,
        out_shape=jax.ShapeDtypeStruct((H, N, D_out), x.dtype),
        grid=(H, nt),
        in_specs=in_specs,
        out_specs=pl.BlockSpec((None, tn, D_out), lambda h, n: (h, n, 0)),
        compiler_params=params,
    )(x_heads, weights, b3)

    if mode == "stack":
        return jnp.transpose(out, (1, 2, 0))                        # (N, D_out, H)
    return jnp.transpose(out, (1, 0, 2)).reshape(N, H * D_out)      # concat fallback


# ---------------------------------------------------------------------------
# Public wrapper: MultiHeadGConv(name='linear', ...) forward
# ---------------------------------------------------------------------------
def multi_head_gconv_linear(x, edge_index, weights, biases, mode="stack"):
    """x: (N, D_in) or (N, D_in, H); edge_index: (2, E) (ignored by 'linear');
    weights: (H, D_in, D_out) with y_h = x_h @ W_h + b_h; biases: (H, D_out)."""
    del edge_index  # LinearGraphWrapper ignores graph structure.
    if mode not in ("stack", "concat", "mean", "max"):
        raise ValueError(mode)
    H = weights.shape[0]
    if x.ndim == 2:
        return _forward_shared(x, weights, biases, mode)
    assert x.ndim == 3 and x.shape[-1] == H
    return _forward_per_head(x, weights, biases, mode)


if __name__ == "__main__":
    key = jax.random.PRNGKey(0)

    N, D_in, D_out, H, E = 16, 32, 32, 2, 8
    kx, kw, kb, ke, kx3 = jax.random.split(key, 5)
    x = jax.random.normal(kx, (N, D_in), dtype=jnp.float32)
    edge_index = jax.random.randint(ke, (2, E), 0, N, dtype=jnp.int32)
    weights = jax.random.normal(kw, (H, D_in, D_out), dtype=jnp.float32) * 0.1
    biases = jax.random.normal(kb, (H, D_out), dtype=jnp.float32) * 0.1

    # --- shared-input case: x (N, D_in) ---
    heads_ref = jnp.stack([x @ weights[h] + biases[h] for h in range(H)], axis=0)
    refs = {
        "stack": jnp.transpose(heads_ref, (1, 2, 0)),
        "concat": jnp.transpose(heads_ref, (1, 0, 2)).reshape(N, H * D_out),
        "mean": jnp.mean(heads_ref, axis=0),
        "max": jnp.max(heads_ref, axis=0),
    }
    for mode, ref in refs.items():
        out = jax.block_until_ready(
            multi_head_gconv_linear(x, edge_index, weights, biases, mode=mode))
        assert out.shape == ref.shape, (mode, out.shape, ref.shape)
        assert jnp.allclose(out, ref, atol=1e-5, rtol=1e-5), mode

    # --- per-head-input case: x (N, D_in, H) ---
    x3 = jax.random.normal(kx3, (N, D_in, H), dtype=jnp.float32)
    heads3_ref = jnp.stack(
        [x3[..., h] @ weights[h] + biases[h] for h in range(H)], axis=0)
    refs3 = {
        "stack": jnp.transpose(heads3_ref, (1, 2, 0)),
        "concat": jnp.transpose(heads3_ref, (1, 0, 2)).reshape(N, H * D_out),
        "mean": jnp.mean(heads3_ref, axis=0),
        "max": jnp.max(heads3_ref, axis=0),
    }
    for mode, ref in refs3.items():
        out = jax.block_until_ready(
            multi_head_gconv_linear(x3, edge_index, weights, biases, mode=mode))
        assert out.shape == ref.shape, (mode, out.shape, ref.shape)
        assert jnp.allclose(out, ref, atol=1e-5, rtol=1e-5), mode

    print("KERNEL_OK")
</pallas_src>

<mosaic_0001>
module attributes {stable_mosaic.version = 11 : i64} {
  func.func @_linear_kernel(%arg0: i32, %arg1: i32, %arg2: memref<16x32xf32, #tpu.memory_space<vmem>>, %arg3: memref<32x64xf32, #tpu.memory_space<vmem>>, %arg4: memref<1x64xf32, #tpu.memory_space<vmem>>, %arg5: memref<16x64xf32, #tpu.memory_space<vmem>>) attributes {dimension_semantics = [#tpu.dimension_semantics<parallel>, #tpu.dimension_semantics<parallel>], iteration_bounds = array<i64: 1, 1>, scalar_prefetch = 0 : i64, scratch_operands = 0 : i64, tpu.core_type = #tpu.core_type<tc>, window_params = [{transform_indices = @transform_0, window_bounds = array<i64: 16, 32>}, {transform_indices = @transform_1, window_bounds = array<i64: 32, 64>}, {transform_indices = @transform_2, window_bounds = array<i64: 1, 64>}, {transform_indices = @transform_3, window_bounds = array<i64: 16, 64>}]} {
    %c0 = arith.constant 0 : index
    %c0_0 = arith.constant 0 : index
    %0 = vector.load %arg2[%c0, %c0_0] : memref<16x32xf32, #tpu.memory_space<vmem>>, vector<16x32xf32>
    %c0_1 = arith.constant 0 : index
    %c0_2 = arith.constant 0 : index
    %1 = vector.load %arg3[%c0_1, %c0_2] : memref<32x64xf32, #tpu.memory_space<vmem>>, vector<32x64xf32>
    %cst = arith.constant dense<0.000000e+00> : vector<16x64xf32>
    %2 = tpu.matmul %0, %1, %cst {dimension_numbers = #tpu.dot_dimension_numbers<[1], [0], [0], [1], [0, 0, 1, 1], [], []>} : vector<16x32xf32>, vector<32x64xf32>, vector<16x64xf32> -> vector<16x64xf32>
    %c0_3 = arith.constant 0 : index
    %c0_4 = arith.constant 0 : index
    %3 = vector.load %arg4[%c0_3, %c0_4] : memref<1x64xf32, #tpu.memory_space<vmem>>, vector<1x64xf32>
    %4 = vector.broadcast %3 : vector<1x64xf32> to vector<16x64xf32>
    %5 = arith.addf %2, %4 : vector<16x64xf32>
    %c0_5 = arith.constant 0 : index
    %c0_6 = arith.constant 0 : index
    %6 = vector.load %arg5[%c0_5, %c0_6] : memref<16x64xf32, #tpu.memory_space<vmem>>, vector<16x64xf32>
    tpu.vector_store %arg5[%c0_5, %c0_6], %5 {strides = array<i32>} : memref<16x64xf32, #tpu.memory_space<vmem>>, vector<16x64xf32>,
    return
  }
  func.func @transform_0(%arg0: i32, %arg1: i32) -> (i32, i32) {
    %c0_i32 = arith.constant 0 : i32
    %c0_i32_0 = arith.constant 0 : i32
    return %arg0, %c0_i32 : i32, i32
  }
  func.func @transform_1(%arg0: i32, %arg1: i32) -> (i32, i32) {
    %c0_i32 = arith.constant 0 : i32
    %c0_i32_0 = arith.constant 0 : i32
    return %c0_i32, %arg1 : i32, i32
  }
  func.func @transform_2(%arg0: i32, %arg1: i32) -> (i32, i32) {
    %c0_i32 = arith.constant 0 : i32
    %c0_i32_0 = arith.constant 0 : i32
    return %c0_i32, %arg1 : i32, i32
  }
  func.func @transform_3(%arg0: i32, %arg1: i32) -> (i32, i32) {
    %c0_i32 = arith.constant 0 : i32
    return %arg0, %arg1 : i32, i32
  }
}

</mosaic_0001>

<bundles_post_ra>
// kernel: tpu_custom_call.1
= control target key start
LH: loop header
LB: loop body
LE: loop exit
PB: predicated region body
PF: predicated region fallthrough
CT: control target
= control target key end

     0   :  { %8 = vsyncpa [#allocation3], 0  ;;  %s337_s0 = inlined_call_operand.hbm [shape: f32[16,32], index: 0, kind: input, shape index: {}]   ;;  %s338_s1 = inlined_call_operand.hbm [shape: f32[32,64], index: 1, kind: input, shape index: {}]   ;;  %s339_s2 = inlined_call_operand.vmem [shape: f32[1,64], index: 2, kind: input, shape index: {}]   ;;  %s340_s3 = inlined_call_operand.hbm [shape: f32[16,64], index: 3, kind: output, shape index: {}]  }
   0x1   :  { %9 = vsyncpa [#allocation6], 0 }
   0x2   :  { %10 = vsyncpa [#allocation4], 0  ;;  %s264_s12 = smov [#allocation2]   ;;  %s192_s16 = scalar_lea.hbm %s337_s0, 256 }
   0x3   :  { %s16_s13 = sshll.u32 %s264_s12, 4  ;;  %p193_p0 = scmp.ne.s32.totalorder %s337_s0, %s192_s16  ;;  %s17_s13 = int_to_ptr.vmem [resolvable:$true] %s16_s13 }
   0x4   :  { %p196_p1 = scmp.lt.u32.totalorder %s192_s16, %s337_s0 }
   0x6   :  { %p198_p2 = pnand %p196_p1, %p193_p0 }
   0x8   :  { %201 = shalt.err (!%p198_p2)
}
   0x9   :  { %s202_s21 = scalar_lea.vmem %s17_s13, 256  ;;  %p207_p4 = scmp.lt.s32.totalorder %s17_s13, %s17_s13 }
   0xa   :  { %p203_p3 = scmp.ne.s32.totalorder %s17_s13, %s202_s21  ;;  %p208_p5 = scmp.lt.s32.totalorder %s202_s21, %s202_s21 }
   0xc   :  { %p209_p6 = por %p208_p5, %p207_p4 }
   0xe   :  { %p210_p7 = pnand %p209_p6, %p203_p3 }
  0x10   :  { %213 = shalt.err (!%p210_p7)
}
  0x11   :  { %s265_s22 = smov 128   ;;  %s266_s23 = smov 8  }
  0x12   :  { %22 = dma.hbm_to_vmem [thread:$0]  %s337_s0, 256, %s17_s13, [#allocation3], %s265_s22, %s265_s22, %s266_s23  }
  0x13   :  { %s267_s26 = smov [#allocation5]   ;;  %s214_s30 = scalar_lea.hbm %s338_s1, 512 }
  0x14   :  { %s28_s27 = sshll.u32 %s267_s26, 4  ;;  %p215_p8 = scmp.ne.s32.totalorder %s338_s1, %s214_s30  ;;  %s29_s27 = int_to_ptr.vmem [resolvable:$true] %s28_s27 }
  0x15   :  { %p218_p9 = scmp.lt.u32.totalorder %s214_s30, %s338_s1 }
  0x17   :  { %p220_p10 = pnand %p218_p9, %p215_p8 }
  0x19   :  { %223 = shalt.err (!%p220_p10)
}
  0x1a   :  { %s224_s8 = scalar_lea.vmem %s29_s27, 512  ;;  %p229_p12 = scmp.lt.s32.totalorder %s29_s27, %s29_s27 }
  0x1b   :  { %p225_p11 = scmp.ne.s32.totalorder %s29_s27, %s224_s8  ;;  %p230_p13 = scmp.lt.s32.totalorder %s224_s8, %s224_s8 }
  0x1d   :  { %p231_p0 = por %p230_p13, %p229_p12 }
  0x1f   :  { %p232_p1 = pnand %p231_p0, %p225_p11 }
  0x21   :  { %235 = shalt.err (!%p232_p1)
}
  0x22   :  { %34 = dma.hbm_to_vmem [thread:$0]  %s338_s1, 512, %s29_s27, [#allocation6], %s265_s22, %s265_s22, %s266_s23  }
  0x23   :  { %258 = dma.done.wait [#allocation3], 256  }
  0x24   :  { %259 = vsyncadd [#allocation3], 4294967040 }
  0x25   :  { %260 = dma.done.wait [#allocation6], 512  }
  0x26   :  { %261 = vsyncadd [#allocation6], 4294966784  ;;  %vm56_vm0 = vcmask 261120   ;;  %v45_v0 = vld [vmem:[#allocation5] sm:$0xff]  ;;  %v46_v1 = vld [vmem:[#allocation5 + $0x8] sm:$0xff]  ;;  %s268_s11 = smov [#allocation7]  }
  0x27   :  { %v47_v2 = vld [vmem:[#allocation5 + $0x10] sm:$0xff]  ;;  %v179_v3 = vpack.c.bf16 %v46_v1, %v45_v0  ;;  %v48_v4 = vld [vmem:[#allocation5 + $0x18] sm:$0xff]  ;;  %s146_s12 = sshll.u32 %s268_s11, 4  ;;  %vm138_vm1 = vcmask 523264   ;;  %s147_s12 = int_to_ptr.vmem [resolvable:$true] %s146_s12 }
  0x28   :  { %v43_v5 = vld [vmem:[#allocation2] sm:$0xff]  ;;  %v183_v6 = vpack.c.bf16 %v48_v4, %v47_v2  ;;  %v44_v7 = vld [vmem:[#allocation2 + $0x8] sm:$0xff]  ;;  %s236_s13 = scalar_lea.vmem %s147_s12, 256  ;;  %p241_p3 = scmp.lt.s32.totalorder %s147_s12, %s147_s12 }
  0x29   :  { %176 = vmatprep.mubr.msk.f32.mxu0 %vm56_vm0, %v43_v5  ;;  %180 = vmatprep.subr.bf16.mxu0 %v179_v3  ;;  %v159_v8 = vld [vmem:[%s339_s2] ss:$0 sm:$0xff]  ;;  %p237_p2 = scmp.ne.s32.totalorder %s147_s12, %s236_s13  ;;  %p242_p4 = scmp.lt.s32.totalorder %s236_s13, %s236_s13 }
  0x2a   :  { %182 = vmatpush3.bf16.msra.mxu0 %v179_v3 }
  0x2b   :  { %184 = vmatprep.subr.bf16.mxu0 %v183_v6  ;;  %p243_p5 = por %p242_p4, %p241_p3 }
  0x2d   :  { %p244_p6 = pnand %p243_p5, %p237_p2 }
  0x2e   :  { %186 = vmatpush3.bf16.msra.mxu0 %v183_v6 }
  0x31   :  { %177 = vmatmul.mubr.msk.f32.vlgmr.msra.gmra.mrb[0].mxu0 %vm56_vm0, %v44_v7 }
 0x104   :  { %v178_v9 = vpop.f32.mrb[0].mxu0 }
 0x105   :  { %v135_v10 = vadd.f32 %v178_v9, %v159_v8  ;;  %v129_v11 = vpop.f32.mrb[1].mxu0 }
 0x106   :  { %v130_v12 = vadd.f32 %v159_v8, %v129_v11 }
 0x107   :  { %140 = vst.msk [vmem:[#allocation7 + $0x8] sm:$0xff] %vm138_vm1, %v135_v10 }
 0x108   :  { %139 = vst.msk [vmem:[#allocation7] sm:$0xff] %vm138_vm1, %v130_v12 }
 0x109   :  { %247 = shalt.err (!%p244_p6)
}
 0x10a   :  { %s248_s2 = scalar_lea.hbm %s340_s3, 256 }
 0x10b   :  { %p249_p7 = scmp.ne.s32.totalorder %s340_s3, %s248_s2  ;;  %p252_p8 = scmp.lt.u32.totalorder %s248_s2, %s340_s3 }
 0x10d   :  { %p254_p9 = pnand %p252_p8, %p249_p7 }
 0x10f   :  { %257 = shalt.err (!%p254_p9)
}
 0x110   :  { %152 = dma.vmem_to_hbm [thread:$0]  %s147_s12, 256, %s340_s3, [#allocation4], %s265_s22, %s265_s22, %s266_s23  }
 0x111   :  { %262 = dma.done.wait [#allocation4], 256  }
 0x112   :  { %263 = vsyncadd [#allocation4], 4294967040 }
 0x113   :  { %156 = vsyncpa [#allocation3], 1 }
 0x114   :  { %157 = vsyncpa [#allocation6], 1 }
 0x115   :  { %158 = vsyncpa [#allocation4], 1 }

</bundles_post_ra>
